<compile_context>
chip_gen: v7x
topology: tpu7x:2x2x1
jax: 0.10.0
libtpu: 0.0.40
codegen_flags: <defaults>
</compile_context>

<pallas_src>
import jax
import jax.numpy as jnp
import numpy as np
from jax.experimental import pallas as pl
from jax.experimental.pallas import tpu as pltpu

# ---------------- problem sizes (small, consistent with the module) ----------------
B = 8          # batch
E = 32         # input_encoding_size
R = 32         # rnn_size
H = 32         # att_hid_size
A = 16         # att_size (number of attention regions)
FC = 64        # fc_feat_size (fc_feats is unused by Att2in2Core.forward)
A_H = A * H    # 512
A_R = A * R    # 512

TB = 8         # batch tile (rows per grid step along the "parallel" batch axis)
ITR_OFF = 0    # in_transform columns within the 256-wide "sums" block
GATE_OFF = 128 # gate columns within the 256-wide "sums" block (128-aligned)
SUMS_W = 256   # [in_transform 2R | pad | gates 3R | pad]
FUSED_W = A_H + SUMS_W   # 768 fused h-projection columns
OUT_W = 128    # lane-dense per-step output slab: [next_h 32 | next_c 32 | pad 64]


def att2in2_kernel(
    # data (per grid step)
    xt_ref,        # (TB, E)      word embedding for this timestep / batch tile
    h0_ref,        # (TB, R)      initial hidden state (read only at t == 0)
    c0_ref,        # (TB, R)      initial cell state   (read only at t == 0)
    patt_ref,      # (TB, A*H)    pre-projected att feats, lane-dense 2-D (resident over t)
    att_ref,       # (TB, A*R)    att feats, lane-dense 2-D (resident over t)
    # packed weights (resident across the whole call: constant index_maps)
    wh_ref,        # (R, 768)     bf16: [tiled h2att | h2h(in_tr) | pad | h2h(gates) | pad]
    bh_ref,        # (1, 768)     f32 : [tiled b_h2att | (b_i2h+b_h2h) reordered/padded]
    wx_ref,        # (E, 256)     bf16: i2h, reordered/padded to match the sums block
    walpha_ref,    # (A*H, A)     bf16: block-diag alpha_net weight
    expand_ref,    # (A, A*R)     bf16: 0/1 expansion weight[b,a] -> lanes of region a
    wcomb_ref,     # (A*R, 2R)    bf16: folded region-reduce @ a2c  (kron(1_A, w_a2c^T))
    bac_ref,       # (1, 2R)      f32 : a2c bias
    # output
    out_ref,       # (TB, 128)    [next_h | next_c | zero pad]  (lane-dense slab)
    # scratch (state carried across the T grid axis)
    h_scr,         # (TB, R) f32
    c_scr,         # (TB, R) f32
):
    t = pl.program_id(1)

    @pl.when(t == 0)
    def _():
        h_scr[...] = h0_ref[...]
        c_scr[...] = c0_ref[...]

    h = h_scr[...]
    c_prev = c_scr[...]

    # ---- fused h projection (tiled h2att + reordered h2h) : one bf16 MXU matmul ----
    hf = jnp.dot(h.astype(jnp.bfloat16), wh_ref[...],
                 preferred_element_type=jnp.float32) + bh_ref[...]            # (TB, 768)
    # xt only contributes to the non-attention columns (its h2att rows are zero).
    xs = jnp.dot(xt_ref[...].astype(jnp.bfloat16), wx_ref[...],
                 preferred_element_type=jnp.float32)                          # (TB, 256)
    att_pre = hf[:, :A_H]                                                     # (TB, 512)
    sums = hf[:, A_H:] + xs                                                   # (TB, 256)

    # ---------------- attention (fully lane-dense 2-D) ----------------
    dot2d = jnp.tanh(patt_ref[...] + att_pre)                                 # (TB, 512)
    logits = jnp.dot(dot2d.astype(jnp.bfloat16), walpha_ref[...],
                     preferred_element_type=jnp.float32)                      # (TB, A)
    # safe softmax: row-max subtraction (cheap 16-lane reduce) + exact reciprocal.
    logits = logits - jnp.max(logits, axis=-1, keepdims=True)
    e = jnp.exp(logits)
    weight = e / jnp.sum(e, axis=-1, keepdims=True)                           # (TB, A)
    w_rep = jnp.dot(weight.astype(jnp.bfloat16), expand_ref[...],
                    preferred_element_type=jnp.float32)                       # (TB, A*R)
    # a2c contribution with the region reduction folded into one matmul:
    #   a2c = (weight⊗1_R * att) @ kron(1_A, w_a2c^T) + b_a2c
    a2c = jnp.dot((w_rep * att_ref[...]).astype(jnp.bfloat16), wcomb_ref[...],
                  preferred_element_type=jnp.float32) + bac_ref[...]          # (TB, 2R)

    # ---------------- att2in2 LSTM cell ----------------
    in_tr_full = sums[:, ITR_OFF:ITR_OFF + 2 * R] + a2c                       # (TB, 2R)
    in_tr = jnp.maximum(in_tr_full[:, :R], in_tr_full[:, R:2 * R])            # (TB, R)
    sig = jax.nn.sigmoid(sums[:, GATE_OFF:GATE_OFF + 3 * R])                  # one EUP pass
    in_gate = sig[:, :R]
    forget_gate = sig[:, R:2 * R]
    out_gate = sig[:, 2 * R:3 * R]

    next_c = forget_gate * c_prev + in_gate * in_tr
    next_h = out_gate * jnp.tanh(next_c)

    # carry state to the next timestep
    h_scr[...] = next_h
    c_scr[...] = next_c

    # dropout in eval mode -> identity
    # TODO(synk): training-mode dropout (stochastic mask via pltpu.prng_*) not reproduced.
    out_ref[:, :R] = next_h
    out_ref[:, R:2 * R] = next_c
    out_ref[:, 2 * R:] = jnp.zeros((TB, OUT_W - 2 * R), jnp.float32)


def att2in2_multistep(xts, att_feats, p_att_feats, h0, c0, kernel_params):
    """T teacher-forced timesteps in ONE pallas_call (grid over T, resident weights)."""
    T = xts.shape[0]
    assert B % TB == 0
    nb = B // TB
    p_att2d = p_att_feats.reshape(B, A_H)     # lane-dense 2-D, layout plumbing only
    att2d = att_feats.reshape(B, A_R)

    wh, bh, wx, walpha, expand, wcomb, bac = kernel_params

    out = pl.pallas_call(
        att2in2_kernel,
        out_shape=jax.ShapeDtypeStruct((T, B, OUT_W), jnp.float32),
        grid_spec=pltpu.PrefetchScalarGridSpec(
            num_scalar_prefetch=0,
            grid=(nb, T),                                        # T innermost ("arbitrary")
            in_specs=[
                pl.BlockSpec((None, TB, E), lambda b, t: (t, b, 0)),    # xts (per step)
                pl.BlockSpec((TB, R), lambda b, t: (b, 0)),             # h0  (per batch tile)
                pl.BlockSpec((TB, R), lambda b, t: (b, 0)),             # c0
                pl.BlockSpec((TB, A_H), lambda b, t: (b, 0)),           # p_att (resident over t)
                pl.BlockSpec((TB, A_R), lambda b, t: (b, 0)),           # att   (resident over t)
                pl.BlockSpec((R, FUSED_W), lambda b, t: (0, 0)),        # wh  (resident)
                pl.BlockSpec((1, FUSED_W), lambda b, t: (0, 0)),        # bh
                pl.BlockSpec((E, SUMS_W), lambda b, t: (0, 0)),         # wx
                pl.BlockSpec((A_H, A), lambda b, t: (0, 0)),            # walpha
                pl.BlockSpec((A, A_R), lambda b, t: (0, 0)),            # expand
                pl.BlockSpec((A_R, 2 * R), lambda b, t: (0, 0)),        # wcomb (reduce@a2c)
                pl.BlockSpec((1, 2 * R), lambda b, t: (0, 0)),          # b_a2c
            ],
            out_specs=pl.BlockSpec((None, TB, OUT_W), lambda b, t: (t, b, 0)),
            scratch_shapes=[pltpu.VMEM((TB, R), jnp.float32),           # h carried over t
                            pltpu.VMEM((TB, R), jnp.float32)],          # c carried over t
        ),
        compiler_params=pltpu.CompilerParams(
            dimension_semantics=("parallel", "arbitrary"),
            vmem_limit_bytes=32 * 1024 * 1024),
    )(xts, h0, c0, p_att2d, att2d, wh, bh, wx, walpha, expand, wcomb, bac)

    hs = out[:, :, :R]
    cs = out[:, :, R:2 * R]
    return hs, cs


def att2in2_core(xt, fc_feats, att_feats, p_att_feats, state, kernel_params):
    """Mirrors Att2in2Core.forward(xt, fc_feats, att_feats, p_att_feats, state)."""
    del fc_feats  # unused by Att2in2Core.forward (matches the PyTorch module)
    state_h, state_c = state
    hs, cs = att2in2_multistep(xt[None], att_feats, p_att_feats,
                               state_h[-1], state_c[-1], kernel_params)
    next_h, next_c = hs[0], cs[0]
    output = next_h  # eval-mode dropout == identity
    return output, (next_h[None], next_c[None])


# ------------- deterministic parameter construction (PyTorch __init__ shapes) -------------
def make_params(key):
    ks = jax.random.split(key, 10)
    u = lambda k, shape, s=0.1: jax.random.uniform(k, shape, jnp.float32, -s, s)

    w_a2c = u(ks[0], (2 * R, R))      # a2c: Linear(R, 2R)
    b_a2c = u(ks[1], (2 * R,))
    w_i2h = u(ks[2], (5 * R, E))      # i2h: Linear(E, 5R)
    b_i2h = u(ks[3], (5 * R,))
    w_h2h = u(ks[4], (5 * R, R))      # h2h: Linear(R, 5R)
    b_h2h = u(ks[5], (5 * R,))
    w_h2att = u(ks[6], (H, R))        # attention.h2att: Linear(R, H)
    b_h2att = u(ks[7], (H,))
    w_alpha = u(ks[8], (1, H))        # attention.alpha_net: Linear(H, 1)
    b_alpha = u(ks[9], (1,))

    torch_params = dict(
        w_a2c=w_a2c, b_a2c=b_a2c, w_i2h=w_i2h, b_i2h=b_i2h, w_h2h=w_h2h, b_h2h=b_h2h,
        w_h2att=w_h2att, b_h2att=b_h2att, w_alpha=w_alpha, b_alpha=b_alpha,
    )

    bsum = b_i2h + b_h2h

    # h-side fused weight (R, 768): [tiled h2att (512) | in_transform (64) | pad | gates (96) | pad]
    wh = jnp.zeros((R, FUSED_W), jnp.float32)
    wh = wh.at[:, :A_H].set(jnp.tile(w_h2att.T, (1, A)))
    wh = wh.at[:, A_H + ITR_OFF:A_H + ITR_OFF + 2 * R].set(w_h2h.T[:, 3 * R:5 * R])
    wh = wh.at[:, A_H + GATE_OFF:A_H + GATE_OFF + 3 * R].set(w_h2h.T[:, :3 * R])

    bh = jnp.zeros((1, FUSED_W), jnp.float32)
    bh = bh.at[0, :A_H].set(jnp.tile(b_h2att, A))
    bh = bh.at[0, A_H + ITR_OFF:A_H + ITR_OFF + 2 * R].set(bsum[3 * R:])
    bh = bh.at[0, A_H + GATE_OFF:A_H + GATE_OFF + 3 * R].set(bsum[:3 * R])

    # xt-side weight (E, 256): only the non-attention columns (same reordering/padding)
    wx = jnp.zeros((E, SUMS_W), jnp.float32)
    wx = wx.at[:, ITR_OFF:ITR_OFF + 2 * R].set(w_i2h.T[:, 3 * R:5 * R])
    wx = wx.at[:, GATE_OFF:GATE_OFF + 3 * R].set(w_i2h.T[:, :3 * R])

    # block-diagonal alpha_net weight (bias dropped: constant logit shift cancels in softmax)
    w_alpha_blk = jnp.kron(jnp.eye(A, dtype=jnp.float32), w_alpha.reshape(H, 1))      # (A*H, A)
    # 0/1 expansion (weight -> region lanes), exact in bf16
    expand_mat = jnp.kron(jnp.eye(A, dtype=jnp.float32), jnp.ones((1, R), jnp.float32))  # (A, A*R)
    # folded region-reduction @ a2c : one matmul instead of two
    w_comb = jnp.kron(jnp.ones((A, 1), jnp.float32), w_a2c.T)                          # (A*R, 2R)

    bf16 = jnp.bfloat16
    kernel_params = (
        wh.astype(bf16),               # matmul weights in bf16 (half DMA / VMEM, MXU-native)
        bh,                            # biases stay f32 (added post-matmul)
        wx.astype(bf16),
        w_alpha_blk.astype(bf16),
        expand_mat.astype(bf16),
        w_comb.astype(bf16),
        b_a2c.reshape(1, 2 * R),
    )
    return torch_params, kernel_params


# ---------------- pure-JAX reference (mirrors the PyTorch module exactly, f32) ----------------
def ref_forward(xt, att_feats, p_att_feats, h_prev, c_prev, p):
    att_h = h_prev @ p["w_h2att"].T + p["b_h2att"]                     # (B, H)
    dot = jnp.tanh(p_att_feats + att_h[:, None, :])                    # (B, A, H)
    logits = (dot.reshape(-1, H) @ p["w_alpha"].T + p["b_alpha"]).reshape(B, A)
    weight = jax.nn.softmax(logits, axis=1)
    att_res = jnp.einsum("ba,bar->br", weight, att_feats)              # (B, R)

    all_sums = (xt @ p["w_i2h"].T + p["b_i2h"]) + (h_prev @ p["w_h2h"].T + p["b_h2h"])
    sig = jax.nn.sigmoid(all_sums[:, :3 * R])
    in_gate = sig[:, 0 * R:1 * R]
    forget_gate = sig[:, 1 * R:2 * R]
    out_gate = sig[:, 2 * R:3 * R]
    in_tr = all_sums[:, 3 * R:5 * R] + att_res @ p["w_a2c"].T + p["b_a2c"]
    in_tr = jnp.maximum(in_tr[:, :R], in_tr[:, R:2 * R])
    next_c = forget_gate * c_prev + in_gate * in_tr
    next_h = out_gate * jnp.tanh(next_c)
    return next_h, next_h, next_c          # output (eval dropout == identity), h, c


if __name__ == "__main__":
    key = jax.random.PRNGKey(0)
    k_data, k_par = jax.random.split(key)
    kd = jax.random.split(k_data, 6)

    T = 4
    xts = jax.random.normal(kd[0], (T, B, E), jnp.float32)             # teacher-forced inputs
    fc_feats = jax.random.normal(kd[1], (B, FC), jnp.float32)          # unused by the core
    att_feats = jax.random.normal(kd[2], (B, A, R), jnp.float32)
    p_att_feats = jax.random.normal(kd[3], (B, A, H), jnp.float32)
    state_h = jax.random.normal(kd[4], (1, B, R), jnp.float32)
    state_c = jax.random.normal(kd[5], (1, B, R), jnp.float32)

    torch_params, kernel_params = make_params(k_par)

    # Tolerance: matmul operands are bf16 (per perf review) with f32 accumulation; typical
    # error is ~1e-3, tolerance sized for worst-case bf16 rounding across the recurrent chain.
    tol = dict(rtol=5e-2, atol=5e-2)

    # ---- single step: exactly Att2in2Core.forward ----
    out, (nh, nc) = att2in2_core(xts[0], fc_feats, att_feats, p_att_feats,
                                 (state_h, state_c), kernel_params)
    jax.block_until_ready((out, nh, nc))
    r_out, r_h, r_c = ref_forward(xts[0], att_feats, p_att_feats,
                                  state_h[-1], state_c[-1], torch_params)
    np.testing.assert_allclose(np.asarray(out), np.asarray(r_out), **tol)
    np.testing.assert_allclose(np.asarray(nh[0]), np.asarray(r_h), **tol)
    np.testing.assert_allclose(np.asarray(nc[0]), np.asarray(r_c), **tol)

    # ---- T-step teacher-forced decode in ONE kernel call (weights resident, state in VMEM) ----
    hs, cs = att2in2_multistep(xts, att_feats, p_att_feats,
                               state_h[-1], state_c[-1], kernel_params)
    jax.block_until_ready((hs, cs))
    rh, rc = state_h[-1], state_c[-1]
    for t in range(T):
        _, rh, rc = ref_forward(xts[t], att_feats, p_att_feats, rh, rc, torch_params)
        np.testing.assert_allclose(np.asarray(hs[t]), np.asarray(rh), **tol)
        np.testing.assert_allclose(np.asarray(cs[t]), np.asarray(rc), **tol)

    print("KERNEL_OK")
</pallas_src>

<mosaic_0001>
module attributes {stable_mosaic.version = 11 : i64} {
  func.func @att2in2_kernel(%arg0: i32, %arg1: i32, %arg2: memref<1x8x32xf32, #tpu.memory_space<vmem>>, %arg3: memref<8x32xf32, #tpu.memory_space<vmem>>, %arg4: memref<8x32xf32, #tpu.memory_space<vmem>>, %arg5: memref<8x512xf32, #tpu.memory_space<vmem>>, %arg6: memref<8x512xf32, #tpu.memory_space<vmem>>, %arg7: memref<32x768xbf16, #tpu.memory_space<vmem>>, %arg8: memref<1x768xf32, #tpu.memory_space<vmem>>, %arg9: memref<32x256xbf16, #tpu.memory_space<vmem>>, %arg10: memref<512x16xbf16, #tpu.memory_space<vmem>>, %arg11: memref<16x512xbf16, #tpu.memory_space<vmem>>, %arg12: memref<512x64xbf16, #tpu.memory_space<vmem>>, %arg13: memref<1x64xf32, #tpu.memory_space<vmem>>, %arg14: memref<1x8x128xf32, #tpu.memory_space<vmem>>, %arg15: memref<8x32xf32, #tpu.memory_space<vmem>>, %arg16: memref<8x32xf32, #tpu.memory_space<vmem>>) attributes {dimension_semantics = [#tpu.dimension_semantics<parallel>, #tpu.dimension_semantics<arbitrary>], iteration_bounds = array<i64: 1, 1>, scalar_prefetch = 0 : i64, scratch_operands = 2 : i64, tpu.core_type = #tpu.core_type<tc>, window_params = [{transform_indices = @transform_0, window_bounds = array<i64: 1, 8, 32>}, {transform_indices = @transform_1, window_bounds = array<i64: 8, 32>}, {transform_indices = @transform_2, window_bounds = array<i64: 8, 32>}, {transform_indices = @transform_3, window_bounds = array<i64: 8, 512>}, {transform_indices = @transform_4, window_bounds = array<i64: 8, 512>}, {pipeline_mode = #tpu.pipeline_mode<synchronous>, transform_indices = @transform_5, window_bounds = array<i64: 32, 768>}, {pipeline_mode = #tpu.pipeline_mode<synchronous>, transform_indices = @transform_6, window_bounds = array<i64: 1, 768>}, {pipeline_mode = #tpu.pipeline_mode<synchronous>, transform_indices = @transform_7, window_bounds = array<i64: 32, 256>}, {pipeline_mode = #tpu.pipeline_mode<synchronous>, transform_indices = @transform_8, window_bounds = array<i64: 512, 16>}, {pipeline_mode = #tpu.pipeline_mode<synchronous>, transform_indices = @transform_9, window_bounds = array<i64: 16, 512>}, {pipeline_mode = #tpu.pipeline_mode<synchronous>, transform_indices = @transform_10, window_bounds = array<i64: 512, 64>}, {pipeline_mode = #tpu.pipeline_mode<synchronous>, transform_indices = @transform_11, window_bounds = array<i64: 1, 64>}, {transform_indices = @transform_12, window_bounds = array<i64: 1, 8, 128>}]} {
    %c0_i32 = arith.constant 0 : i32
    %0 = arith.cmpi eq, %arg1, %c0_i32 : i32
    %1 = arith.extui %0 : i1 to i32
    %c0_i32_0 = arith.constant 0 : i32
    %2 = arith.cmpi ne, %1, %c0_i32_0 : i32
    scf.if %2 {
      %c0_44 = arith.constant 0 : index
      %c0_45 = arith.constant 0 : index
      %76 = vector.load %arg3[%c0_44, %c0_45] : memref<8x32xf32, #tpu.memory_space<vmem>>, vector<8x32xf32>
      %c0_46 = arith.constant 0 : index
      %c0_47 = arith.constant 0 : index
      %77 = vector.load %arg15[%c0_46, %c0_47] : memref<8x32xf32, #tpu.memory_space<vmem>>, vector<8x32xf32>
      tpu.vector_store %arg15[%c0_46, %c0_47], %76 {strides = array<i32>} : memref<8x32xf32, #tpu.memory_space<vmem>>, vector<8x32xf32>,
      %c0_48 = arith.constant 0 : index
      %c0_49 = arith.constant 0 : index
      %78 = vector.load %arg4[%c0_48, %c0_49] : memref<8x32xf32, #tpu.memory_space<vmem>>, vector<8x32xf32>
      %c0_50 = arith.constant 0 : index
      %c0_51 = arith.constant 0 : index
      %79 = vector.load %arg16[%c0_50, %c0_51] : memref<8x32xf32, #tpu.memory_space<vmem>>, vector<8x32xf32>
      tpu.vector_store %arg16[%c0_50, %c0_51], %78 {strides = array<i32>} : memref<8x32xf32, #tpu.memory_space<vmem>>, vector<8x32xf32>,
    } else {
    }
    %c0 = arith.constant 0 : index
    %c0_1 = arith.constant 0 : index
    %3 = vector.load %arg15[%c0, %c0_1] : memref<8x32xf32, #tpu.memory_space<vmem>>, vector<8x32xf32>
    %c0_2 = arith.constant 0 : index
    %c0_3 = arith.constant 0 : index
    %4 = vector.load %arg16[%c0_2, %c0_3] : memref<8x32xf32, #tpu.memory_space<vmem>>, vector<8x32xf32>
    %5 = arith.truncf %3 : vector<8x32xf32> to vector<8x32xbf16>
    %c0_4 = arith.constant 0 : index
    %c0_5 = arith.constant 0 : index
    %6 = vector.load %arg7[%c0_4, %c0_5] : memref<32x768xbf16, #tpu.memory_space<vmem>>, vector<32x768xbf16>
    %cst = arith.constant dense<0.000000e+00> : vector<8x768xf32>
    %7 = tpu.matmul %5, %6, %cst {dimension_numbers = #tpu.dot_dimension_numbers<[1], [0], [0], [1], [0, 0, 1, 1], [], []>} : vector<8x32xbf16>, vector<32x768xbf16>, vector<8x768xf32> -> vector<8x768xf32>
    %c0_6 = arith.constant 0 : index
    %c0_7 = arith.constant 0 : index
    %8 = vector.load %arg8[%c0_6, %c0_7] : memref<1x768xf32, #tpu.memory_space<vmem>>, vector<1x768xf32>
    %9 = vector.broadcast %8 : vector<1x768xf32> to vector<8x768xf32>
    %10 = arith.addf %7, %9 : vector<8x768xf32>
    %c0_8 = arith.constant 0 : index
    %c0_9 = arith.constant 0 : index
    %c0_10 = arith.constant 0 : index
    %11 = vector.load %arg2[%c0_8, %c0_9, %c0_10] : memref<1x8x32xf32, #tpu.memory_space<vmem>>, vector<1x8x32xf32>
    %12 = vector.shape_cast %11 : vector<1x8x32xf32> to vector<8x32xf32>
    %13 = arith.truncf %12 : vector<8x32xf32> to vector<8x32xbf16>
    %c0_11 = arith.constant 0 : index
    %c0_12 = arith.constant 0 : index
    %14 = vector.load %arg9[%c0_11, %c0_12] : memref<32x256xbf16, #tpu.memory_space<vmem>>, vector<32x256xbf16>
    %cst_13 = arith.constant dense<0.000000e+00> : vector<8x256xf32>
    %15 = tpu.matmul %13, %14, %cst_13 {dimension_numbers = #tpu.dot_dimension_numbers<[1], [0], [0], [1], [0, 0, 1, 1], [], []>} : vector<8x32xbf16>, vector<32x256xbf16>, vector<8x256xf32> -> vector<8x256xf32>
    %16 = vector.extract_strided_slice %10 {offsets = [0, 0], sizes = [8, 512], strides = [1, 1]} : vector<8x768xf32> to vector<8x512xf32>
    %17 = vector.extract_strided_slice %10 {offsets = [0, 512], sizes = [8, 256], strides = [1, 1]} : vector<8x768xf32> to vector<8x256xf32>
    %18 = arith.addf %17, %15 : vector<8x256xf32>
    %c0_14 = arith.constant 0 : index
    %c0_15 = arith.constant 0 : index
    %19 = vector.load %arg5[%c0_14, %c0_15] : memref<8x512xf32, #tpu.memory_space<vmem>>, vector<8x512xf32>
    %20 = arith.addf %19, %16 : vector<8x512xf32>
    %21 = math.tanh %20 : vector<8x512xf32>
    %22 = arith.truncf %21 : vector<8x512xf32> to vector<8x512xbf16>
    %c0_16 = arith.constant 0 : index
    %c0_17 = arith.constant 0 : index
    %23 = vector.load %arg10[%c0_16, %c0_17] : memref<512x16xbf16, #tpu.memory_space<vmem>>, vector<512x16xbf16>
    %cst_18 = arith.constant dense<0.000000e+00> : vector<8x16xf32>
    %24 = tpu.matmul %22, %23, %cst_18 {dimension_numbers = #tpu.dot_dimension_numbers<[1], [0], [0], [1], [0, 0, 1, 1], [], []>} : vector<8x512xbf16>, vector<512x16xbf16>, vector<8x16xf32> -> vector<8x16xf32>
    %cst_19 = arith.constant dense<0xFF800000> : vector<8xf32>
    %25 = vector.multi_reduction <maximumf>, %24, %cst_19 [1] : vector<8x16xf32> to vector<8xf32>
    %26 = vector.shape_cast %25 : vector<8xf32> to vector<8x1xf32>
    %27 = vector.broadcast %26 : vector<8x1xf32> to vector<8x16xf32>
    %28 = arith.subf %24, %27 : vector<8x16xf32>
    %29 = math.exp %28 : vector<8x16xf32>
    %cst_20 = arith.constant dense<0.000000e+00> : vector<8xf32>
    %30 = vector.multi_reduction <add>, %29, %cst_20 [1] : vector<8x16xf32> to vector<8xf32>
    %31 = vector.shape_cast %30 : vector<8xf32> to vector<8x1xf32>
    %32 = vector.broadcast %31 : vector<8x1xf32> to vector<8x16xf32>
    %33 = arith.divf %29, %32 : vector<8x16xf32>
    %34 = arith.truncf %33 : vector<8x16xf32> to vector<8x16xbf16>
    %c0_21 = arith.constant 0 : index
    %c0_22 = arith.constant 0 : index
    %35 = vector.load %arg11[%c0_21, %c0_22] : memref<16x512xbf16, #tpu.memory_space<vmem>>, vector<16x512xbf16>
    %cst_23 = arith.constant dense<0.000000e+00> : vector<8x512xf32>
    %36 = tpu.matmul %34, %35, %cst_23 {dimension_numbers = #tpu.dot_dimension_numbers<[1], [0], [0], [1], [0, 0, 1, 1], [], []>} : vector<8x16xbf16>, vector<16x512xbf16>, vector<8x512xf32> -> vector<8x512xf32>
    %c0_24 = arith.constant 0 : index
    %c0_25 = arith.constant 0 : index
    %37 = vector.load %arg6[%c0_24, %c0_25] : memref<8x512xf32, #tpu.memory_space<vmem>>, vector<8x512xf32>
    %38 = arith.mulf %36, %37 : vector<8x512xf32>
    %39 = arith.truncf %38 : vector<8x512xf32> to vector<8x512xbf16>
    %c0_26 = arith.constant 0 : index
    %c0_27 = arith.constant 0 : index
    %40 = vector.load %arg12[%c0_26, %c0_27] : memref<512x64xbf16, #tpu.memory_space<vmem>>, vector<512x64xbf16>
    %cst_28 = arith.constant dense<0.000000e+00> : vector<8x64xf32>
    %41 = tpu.matmul %39, %40, %cst_28 {dimension_numbers = #tpu.dot_dimension_numbers<[1], [0], [0], [1], [0, 0, 1, 1], [], []>} : vector<8x512xbf16>, vector<512x64xbf16>, vector<8x64xf32> -> vector<8x64xf32>
    %c0_29 = arith.constant 0 : index
    %c0_30 = arith.constant 0 : index
    %42 = vector.load %arg13[%c0_29, %c0_30] : memref<1x64xf32, #tpu.memory_space<vmem>>, vector<1x64xf32>
    %43 = vector.broadcast %42 : vector<1x64xf32> to vector<8x64xf32>
    %44 = arith.addf %41, %43 : vector<8x64xf32>
    %45 = vector.extract_strided_slice %18 {offsets = [0, 0], sizes = [8, 64], strides = [1, 1]} : vector<8x256xf32> to vector<8x64xf32>
    %46 = arith.addf %45, %44 : vector<8x64xf32>
    %47 = vector.extract_strided_slice %46 {offsets = [0, 0], sizes = [8, 32], strides = [1, 1]} : vector<8x64xf32> to vector<8x32xf32>
    %48 = vector.extract_strided_slice %46 {offsets = [0, 32], sizes = [8, 32], strides = [1, 1]} : vector<8x64xf32> to vector<8x32xf32>
    %49 = arith.maximumf %47, %48 : vector<8x32xf32>
    %50 = vector.extract_strided_slice %18 {offsets = [0, 128], sizes = [8, 96], strides = [1, 1]} : vector<8x256xf32> to vector<8x96xf32>
    %51 = arith.negf %50 : vector<8x96xf32>
    %52 = math.exp %51 : vector<8x96xf32>
    %cst_31 = arith.constant 1.000000e+00 : f32
    %53 = vector.broadcast %cst_31 : f32 to vector<8x96xf32>
    %54 = arith.addf %53, %52 : vector<8x96xf32>
    %55 = arith.divf %53, %54 : vector<8x96xf32>
    %56 = vector.extract_strided_slice %55 {offsets = [0, 0], sizes = [8, 32], strides = [1, 1]} : vector<8x96xf32> to vector<8x32xf32>
    %57 = vector.extract_strided_slice %55 {offsets = [0, 32], sizes = [8, 32], strides = [1, 1]} : vector<8x96xf32> to vector<8x32xf32>
    %58 = vector.extract_strided_slice %55 {offsets = [0, 64], sizes = [8, 32], strides = [1, 1]} : vector<8x96xf32> to vector<8x32xf32>
    %59 = arith.mulf %57, %4 : vector<8x32xf32>
    %60 = arith.mulf %56, %49 : vector<8x32xf32>
    %61 = arith.addf %59, %60 : vector<8x32xf32>
    %62 = math.tanh %61 : vector<8x32xf32>
    %63 = arith.mulf %58, %62 : vector<8x32xf32>
    %c0_32 = arith.constant 0 : index
    %c0_33 = arith.constant 0 : index
    %64 = vector.load %arg15[%c0_32, %c0_33] : memref<8x32xf32, #tpu.memory_space<vmem>>, vector<8x32xf32>
    tpu.vector_store %arg15[%c0_32, %c0_33], %63 {strides = array<i32>} : memref<8x32xf32, #tpu.memory_space<vmem>>, vector<8x32xf32>,
    %c0_34 = arith.constant 0 : index
    %c0_35 = arith.constant 0 : index
    %65 = vector.load %arg16[%c0_34, %c0_35] : memref<8x32xf32, #tpu.memory_space<vmem>>, vector<8x32xf32>
    tpu.vector_store %arg16[%c0_34, %c0_35], %61 {strides = array<i32>} : memref<8x32xf32, #tpu.memory_space<vmem>>, vector<8x32xf32>,
    %c0_36 = arith.constant 0 : index
    %c0_37 = arith.constant 0 : index
    %c0_38 = arith.constant 0 : index
    %66 = vector.load %arg14[%c0_36, %c0_37, %c0_38] : memref<1x8x128xf32, #tpu.memory_space<vmem>>, vector<1x8x32xf32>
    %67 = vector.shape_cast %66 : vector<1x8x32xf32> to vector<8x32xf32>
    %68 = vector.shape_cast %63 : vector<8x32xf32> to vector<1x8x32xf32>
    tpu.vector_store %arg14[%c0_36, %c0_37, %c0_38], %68 {strides = array<i32>} : memref<1x8x128xf32, #tpu.memory_space<vmem>>, vector<1x8x32xf32>,
    %c0_39 = arith.constant 0 : index
    %c0_40 = arith.constant 0 : index
    %c32 = arith.constant 32 : index
    %69 = vector.load %arg14[%c0_39, %c0_40, %c32] : memref<1x8x128xf32, #tpu.memory_space<vmem>>, vector<1x8x32xf32>
    %70 = vector.shape_cast %69 : vector<1x8x32xf32> to vector<8x32xf32>
    %71 = vector.shape_cast %61 : vector<8x32xf32> to vector<1x8x32xf32>
    tpu.vector_store %arg14[%c0_39, %c0_40, %c32], %71 {strides = array<i32>} : memref<1x8x128xf32, #tpu.memory_space<vmem>>, vector<1x8x32xf32>,
    %cst_41 = arith.constant 0.000000e+00 : f32
    %72 = vector.broadcast %cst_41 : f32 to vector<8x64xf32>
    %c0_42 = arith.constant 0 : index
    %c0_43 = arith.constant 0 : index
    %c64 = arith.constant 64 : index
    %73 = vector.load %arg14[%c0_42, %c0_43, %c64] : memref<1x8x128xf32, #tpu.memory_space<vmem>>, vector<1x8x64xf32>
    %74 = vector.shape_cast %73 : vector<1x8x64xf32> to vector<8x64xf32>
    %75 = vector.shape_cast %72 : vector<8x64xf32> to vector<1x8x64xf32>
    tpu.vector_store %arg14[%c0_42, %c0_43, %c64], %75 {strides = array<i32>} : memref<1x8x128xf32, #tpu.memory_space<vmem>>, vector<1x8x64xf32>,
    return
  }
  func.func @transform_0(%arg0: i32, %arg1: i32) -> (i32, i32, i32) {
    %c0_i32 = arith.constant 0 : i32
    %c0_i32_0 = arith.constant 0 : i32
    return %arg1, %arg0, %c0_i32 : i32, i32, i32
  }
  func.func @transform_1(%arg0: i32, %arg1: i32) -> (i32, i32) {
    %c0_i32 = arith.constant 0 : i32
    %c0_i32_0 = arith.constant 0 : i32
    return %arg0, %c0_i32 : i32, i32
  }
  func.func @transform_2(%arg0: i32, %arg1: i32) -> (i32, i32) {
    %c0_i32 = arith.constant 0 : i32
    %c0_i32_0 = arith.constant 0 : i32
    return %arg0, %c0_i32 : i32, i32
  }
  func.func @transform_3(%arg0: i32, %arg1: i32) -> (i32, i32) {
    %c0_i32 = arith.constant 0 : i32
    %c0_i32_0 = arith.constant 0 : i32
    return %arg0, %c0_i32 : i32, i32
  }
  func.func @transform_4(%arg0: i32, %arg1: i32) -> (i32, i32) {
    %c0_i32 = arith.constant 0 : i32
    %c0_i32_0 = arith.constant 0 : i32
    return %arg0, %c0_i32 : i32, i32
  }
  func.func @transform_5(%arg0: i32, %arg1: i32) -> (i32, i32) {
    %c0_i32 = arith.constant 0 : i32
    %c0_i32_0 = arith.constant 0 : i32
    %c0_i32_1 = arith.constant 0 : i32
    return %c0_i32, %c0_i32_0 : i32, i32
  }
  func.func @transform_6(%arg0: i32, %arg1: i32) -> (i32, i32) {
    %c0_i32 = arith.constant 0 : i32
    %c0_i32_0 = arith.constant 0 : i32
    %c0_i32_1 = arith.constant 0 : i32
    return %c0_i32, %c0_i32_0 : i32, i32
  }
  func.func @transform_7(%arg0: i32, %arg1: i32) -> (i32, i32) {
    %c0_i32 = arith.constant 0 : i32
    %c0_i32_0 = arith.constant 0 : i32
    %c0_i32_1 = arith.constant 0 : i32
    return %c0_i32, %c0_i32_0 : i32, i32
  }
  func.func @transform_8(%arg0: i32, %arg1: i32) -> (i32, i32) {
    %c0_i32 = arith.constant 0 : i32
    %c0_i32_0 = arith.constant 0 : i32
    %c0_i32_1 = arith.constant 0 : i32
    return %c0_i32, %c0_i32_0 : i32, i32
  }
  func.func @transform_9(%arg0: i32, %arg1: i32) -> (i32, i32) {
    %c0_i32 = arith.constant 0 : i32
    %c0_i32_0 = arith.constant 0 : i32
    %c0_i32_1 = arith.constant 0 : i32
    return %c0_i32, %c0_i32_0 : i32, i32
  }
  func.func @transform_10(%arg0: i32, %arg1: i32) -> (i32, i32) {
    %c0_i32 = arith.constant 0 : i32
    %c0_i32_0 = arith.constant 0 : i32
    %c0_i32_1 = arith.constant 0 : i32
    return %c0_i32, %c0_i32_0 : i32, i32
  }
  func.func @transform_11(%arg0: i32, %arg1: i32) -> (i32, i32) {
    %c0_i32 = arith.constant 0 : i32
    %c0_i32_0 = arith.constant 0 : i32
    %c0_i32_1 = arith.constant 0 : i32
    return %c0_i32, %c0_i32_0 : i32, i32
  }
  func.func @transform_12(%arg0: i32, %arg1: i32) -> (i32, i32, i32) {
    %c0_i32 = arith.constant 0 : i32
    %c0_i32_0 = arith.constant 0 : i32
    return %arg1, %arg0, %c0_i32 : i32, i32, i32
  }
}

</mosaic_0001>

<bundles_post_ra>
// kernel: tpu_custom_call.1
= control target key start
LH: loop header
LB: loop body
LE: loop exit
PB: predicated region body
PF: predicated region fallthrough
CT: control target
= control target key end

     0   :  { %v1567_v2 = vmov 0   ;;  %vm48_vm0 = vcmask 261120   ;;  %s1966_s0 = inlined_call_operand.vmem [shape: f32[1,8,32], index: 0, kind: input, shape index: {}]   ;;  %s1967_s1 = inlined_call_operand.vmem [shape: f32[8,32], index: 1, kind: input, shape index: {}]   ;;  %s1968_s2 = inlined_call_operand.vmem [shape: f32[8,32], index: 2, kind: input, shape index: {}]   ;;  %s1969_s3 = inlined_call_operand.vmem [shape: f32[8,512], index: 3, kind: input, shape index: {}]   ;;  %s1970_s4 = inlined_call_operand.vmem [shape: f32[8,512], index: 4, kind: input, shape index: {}]   ;;  %s1971_s5 = inlined_call_operand.vmem [shape: bf16[32,768], index: 5, kind: input, shape index: {}]   ;;  %s1972_s6 = inlined_call_operand.vmem [shape: f32[1,768], index: 6, kind: input, shape index: {}]   ;;  %s1973_s7 = inlined_call_operand.vmem [shape: bf16[32,256], index: 7, kind: input, shape index: {}]   ;;  %s1974_s8 = inlined_call_operand.vmem [shape: bf16[512,16], index: 8, kind: input, shape index: {}]   ;;  %s1975_s9 = inlined_call_operand.vmem [shape: bf16[16,512], index: 9, kind: input, shape index: {}]   ;;  %s1976_s10 = inlined_call_operand.vmem [shape: bf16[512,64], index: 10, kind: input, shape index: {}]   ;;  %s1977_s11 = inlined_call_operand.vmem [shape: f32[1,64], index: 11, kind: input, shape index: {}]   ;;  %s1978_s12 = inlined_call_operand.hbm [shape: f32[1,8,128], index: 12, kind: output, shape index: {}]  }
   0x1   :  { %v1431_v0 = vld [vmem:[%s1971_s5 + $0x4] ss:$24 sps:$4 sm:$0xff]   ;;  %195 = vmatprep.mubr.bf16.mxu0 %v1567_v2  ;;  %236 = vmatprep.mubr.bf16.mxu1 %v1567_v2  ;;  %v1435_v3 = vld [vmem:[%s1971_s5] ss:$24 sps:$4 sm:$0xff]   ;;  %v1437_v5 = vld [vmem:[%s1971_s5 + $0x34] ss:$24 sps:$4 sm:$0xff]  }
   0x2   :  { %v1433_v1 = vld [vmem:[%s1971_s5 + $0xc] ss:$24 sps:$4 sm:$0xff]   ;;  %163 = vmatprep.subr.bf16.mxu0 %v1431_v0  ;;  %v1436_v4 = vld [vmem:[%s1971_s5 + $0x8] ss:$24 sps:$4 sm:$0xff]   ;;  %v1439_v6 = vld [vmem:[%s1971_s5 + $0x3c] ss:$24 sps:$4 sm:$0xff]  }
   0x3   :  { %204 = vmatprep.subr.bf16.mxu1 %v1433_v1  ;;  %164 = vmatpush1.bf16.msra.mxu0 %v1435_v3  ;;  %v1441_v7 = vld [vmem:[%s1971_s5 + $0x30] ss:$24 sps:$4 sm:$0xff]   ;;  %v47_v9 = vld [vmem:[%s1967_s1] sm:$0xff]  ;;  %v1445_v10 = vld [vmem:[%s1971_s5 + $0x14] ss:$24 sps:$4 sm:$0xff]  }
   0x4   :  { %205 = vmatpush1.bf16.msra.mxu1 %v1436_v4  ;;  %165 = vmatprep.subr.bf16.mxu0 %v1437_v5  ;;  %v1442_v8 = vld [vmem:[%s1971_s5 + $0x38] ss:$24 sps:$4 sm:$0xff]   ;;  %49 = vst.msk [vmem:[#allocation2] sm:$0xff] %vm48_vm0, %v47_v9  ;;  %v1448_v11 = vld [vmem:[%s1973_s7 + $0x4] ss:$8 sps:$4 sm:$0xff]  }
   0x5   :  { %206 = vmatprep.subr.bf16.mxu1 %v1439_v6  ;;  %v1443_v12 = vld [vmem:[%s1971_s5 + $0x10] ss:$24 sps:$4 sm:$0xff]   ;;  %v1451_v15 = vld [vmem:[%s1971_s5 + $0x44] ss:$24 sps:$4 sm:$0xff]   ;;  %v1449_v18 = vld [vmem:[%s1971_s5 + $0x40] ss:$24 sps:$4 sm:$0xff]  }
   0x6   :  { %v1446_v13 = vld [vmem:[%s1973_s7] ss:$8 sps:$4 sm:$0xff]   ;;  %v1454_v17 = vld [vmem:[%s1973_s7 + $0x14] ss:$8 sps:$4 sm:$0xff]   ;;  %v1452_v19 = vld [vmem:[%s1973_s7 + $0x10] ss:$8 sps:$4 sm:$0xff]  }
   0x7   :  { %166 = vmatpush1.bf16.msra.mxu0 %v1441_v7  ;;  %v286_v20 = vld [vmem:[%s1966_s0] sm:$0xff]  ;;  %v1459_v26 = vld [vmem:[%s1974_s8 + $0x48] sm:$0xff]   ;;  %v1463_v30 = vld [vmem:[%s1974_s8 + $0x50] sm:$0xff]  }
   0x8   :  { %207 = vmatpush1.bf16.msra.mxu1 %v1442_v8  ;;  %245 = vmatprep.subr.bf16.mxu0 %v1445_v10  ;;  %v1455_v21 = vld [vmem:[%s1974_s8 + $0x40] sm:$0xff]   ;;  %v287_v24 = vpack.c.bf16 %v286_v20, %v286_v20  ;;  %v1460_v27 = vld [vmem:[%s1974_s8 + $0xc8] sm:$0xff]   ;;  %v1464_v31 = vld [vmem:[%s1974_s8 + $0xd0] sm:$0xff]  }
   0x9   :  { %315 = vmatprep.subr.bf16.mxu1 %v1448_v11  ;;  %v1456_v22 = vld [vmem:[%s1974_s8 + $0xc0] sm:$0xff]   ;;  %v1461_v28 = vld [vmem:[%s1974_s8 + $0x8] sm:$0xff]   ;;  %v1465_v32 = vld [vmem:[%s1974_s8 + $0x10] sm:$0xff]  }
   0xa   :  { %v1457_v23 = vld [vmem:[%s1974_s8] sm:$0xff]   ;;  %v1462_v29 = vld [vmem:[%s1974_s8 + $0x88] sm:$0xff]   ;;  %v1466_v33 = vld [vmem:[%s1974_s8 + $0x90] sm:$0xff]  }
   0xb   :  { %v52_v14 = vld [vmem:[#allocation2] sm:$0xff] }
   0xc   :  { %v54_v16 = vpack.c.bf16 %v52_v14, %v52_v14  ;;  %v1458_v25 = vld [vmem:[%s1974_s8 + $0x80] sm:$0xff]  }
   0xe   :  { %1257 = vmatmul.mubr.msk.bf16.vlgmr.msra.gmra.mrb[0].mxu0 %vm48_vm0, %v54_v16  ;;  %1258 = vmatmul.mubr.msk.bf16.vlgmr.msra.gmra.mrb[0].mxu1 %vm48_vm0, %v54_v16 }
   0xf   :  { %246 = vmatpush1.bf16.msra.mxu0 %v1443_v12  ;;  %316 = vmatpush1.bf16.msra.mxu1 %v1446_v13 }
  0x10   :  { %247 = vmatprep.subr.bf16.mxu0 %v1451_v15  ;;  %317 = vmatprep.subr.bf16.mxu1 %v1454_v17 }
  0x11   :  { %277 = vmatprep.mubr.bf16.mxu0 %v1567_v2  ;;  %347 = vmatprep.mubr.bf16.mxu1 %v1567_v2 }
  0x13   :  { %248 = vmatpush1.bf16.msra.mxu0 %v1449_v18  ;;  %318 = vmatpush1.bf16.msra.mxu1 %v1452_v19 }
  0x14   :  { %1337 = vmatprep.subr.bf16.mxu0 %v1455_v21  ;;  %1359 = vmatprep.subr.bf16.mxu1 %v1456_v22 }
  0x16   :  { %1259 = vmatmul.mubr.msk.bf16.vlgmr.msra.gmra.mrb[4].mxu0 %vm48_vm0, %v54_v16  ;;  %1264 = vmatmul.mubr.msk.bf16.vlgmr.msra.gmra.mrb[4].mxu1 %vm48_vm0, %v287_v24 }
  0x17   :  { %1338 = vmatpush3.bf16.msra.mxu0 %v1457_v23  ;;  %1360 = vmatpush3.bf16.msra.mxu1 %v1458_v25 }
  0x18   :  { %1339 = vmatprep.subr.bf16.mxu0 %v1459_v26  ;;  %1361 = vmatprep.subr.bf16.mxu1 %v1460_v27 }
  0x1b   :  { %1340 = vmatpush3.bf16.msra.mxu0 %v1461_v28  ;;  %1362 = vmatpush3.bf16.msra.mxu1 %v1462_v29 }
  0x1c   :  { %1341 = vmatprep.subr.bf16.mxu0 %v1463_v30  ;;  %1363 = vmatprep.subr.bf16.mxu1 %v1464_v31 }
  0x1f   :  { %1342 = vmatpush3.bf16.msra.mxu0 %v1465_v32  ;;  %1364 = vmatpush3.bf16.msra.mxu1 %v1466_v33 }
  0x20   :  { %17 = vsyncpa [#allocation5], 0  ;;  %v1467_v34 = vld [vmem:[%s1974_s8 + $0x58] sm:$0xff]   ;;  %v1471_v38 = vld [vmem:[%s1974_s8 + $0x60] sm:$0xff]   ;;  %v69_v54 = vlaneseq  ;;  %vm710_vm1 = vcmask 130048   ;;  %s1569_s26 = smov 32  }
  0x21   :  { %v1468_v35 = vld [vmem:[%s1974_s8 + $0xd8] sm:$0xff]   ;;  %1343 = vmatprep.subr.bf16.mxu0 %v1467_v34  ;;  %v1472_v39 = vld [vmem:[%s1974_s8 + $0xe0] sm:$0xff]   ;;  %v1475_v42 = vld [vmem:[%s1974_s8 + $0x68] sm:$0xff]   ;;  %s1571_s1 = smov [#allocation4]   ;;  %vm1227_vm2 = vcmask 523520   ;;  %vm1229_vm3 = vcmask 1048064  }
  0x22   :  { %1365 = vmatprep.subr.bf16.mxu1 %v1468_v35  ;;  %v1469_v36 = vld [vmem:[%s1974_s8 + $0x18] sm:$0xff]   ;;  %v1473_v40 = vld [vmem:[%s1974_s8 + $0x20] sm:$0xff]   ;;  %v1476_v43 = vld [vmem:[%s1974_s8 + $0xe8] sm:$0xff]   ;;  %v70_v55 = vshrl.u32 %v69_v54, 7  ;;  %s1237_s27 = sshll.u32 %s1571_s1, 4  ;;  %s1238_s27 = int_to_ptr.vmem [resolvable:$true] %s1237_s27 }
  0x23   :  { %v1470_v37 = vld [vmem:[%s1974_s8 + $0x98] sm:$0xff]   ;;  %1344 = vmatpush3.bf16.msra.mxu0 %v1469_v36  ;;  %v1474_v41 = vld [vmem:[%s1974_s8 + $0xa0] sm:$0xff]   ;;  %v1477_v44 = vld [vmem:[%s1974_s8 + $0x28] sm:$0xff]   ;;  %s1543_s28 = scalar_lea.vmem %s1238_s27, 128  ;;  %p1548_p1 = scmp.lt.s32.totalorder %s1238_s27, %s1238_s27 }
  0x24   :  { %1366 = vmatpush3.bf16.msra.mxu1 %v1470_v37  ;;  %1345 = vmatprep.subr.bf16.mxu0 %v1471_v38  ;;  %v1478_v45 = vld [vmem:[%s1974_s8 + $0xa8] sm:$0xff]   ;;  %v1479_v46 = vld [vmem:[%s1974_s8 + $0x70] sm:$0xff]   ;;  %v1483_v50 = vld [vmem:[%s1974_s8 + $0x78] sm:$0xff]   ;;  %v71_v56 = vsub.s32 0, %v70_v55  ;;  %v79_v57 = vsub.s32 2, %v70_v55  ;;  %v75_v59 = vsub.s32 1, %v70_v55  ;;  %p1544_p0 = scmp.ne.s32.totalorder %s1238_s27, %s1543_s28  ;;  %p1549_p2 = scmp.lt.s32.totalorder %s1543_s28, %s1543_s28 }
  0x25   :  { %1367 = vmatprep.subr.bf16.mxu1 %v1472_v39  ;;  %v1480_v47 = vld [vmem:[%s1974_s8 + $0xf0] sm:$0xff]   ;;  %v1484_v51 = vld [vmem:[%s1974_s8 + $0xf8] sm:$0xff]   ;;  %v67_v58 = vld [vmem:[%s1972_s6] sm:$0x3f]  ;;  %v83_v60 = vsub.s32 3, %v70_v55  ;;  %v87_v12 = vsub.s32 4, %v70_v55 }
  0x26   :  { %v1481_v48 = vld [vmem:[%s1974_s8 + $0x30] sm:$0xff]   ;;  %v1485_v52 = vld [vmem:[%s1974_s8 + $0x38] sm:$0xff]   ;;  %v72_v61 = vrot.slane %v67_v58, %v71_v56  ;;  %v80_v62 = vrot.slane %v67_v58, %v79_v57  ;;  %v76_v63 = vrot.slane %v67_v58, %v75_v59  ;;  %v358_v3 = vld [vmem:[%s1969_s3] sm:$0xff]  ;;  %v91_v17 = vsub.s32 5, %v70_v55  ;;  %p1550_p3 = por %p1549_p2, %p1548_p1 }
  0x27   :  { %1346 = vmatpush3.bf16.msra.mxu0 %v1473_v40  ;;  %v1482_v49 = vld [vmem:[%s1974_s8 + $0xb0] sm:$0xff]   ;;  %v1486_v53 = vld [vmem:[%s1974_s8 + $0xb8] sm:$0xff]   ;;  %v84_v0 = vrot.slane %v67_v58, %v83_v60  ;;  %v359_v9 = vld [vmem:[%s1969_s3 + $0x8] sm:$0xff]  ;;  %v88_v24 = vrot.slane %v67_v58, %v87_v12 }
  0x28   :  { %1368 = vmatpush3.bf16.msra.mxu1 %v1474_v41  ;;  %1347 = vmatprep.subr.bf16.mxu0 %v1475_v42  ;;  %v360_v5 = vld [vmem:[%s1969_s3 + $0x10] sm:$0xff]  ;;  %v361_v11 = vld [vmem:[%s1969_s3 + $0x18] sm:$0xff]  ;;  %v92_v25 = vrot.slane %v67_v58, %v91_v17  ;;  %v1498_v12 = vld [vmem:[%s1976_s10 + $0xc8] sm:$0xff]   ;;  %p1551_p4 = pnand %p1550_p3, %p1544_p0 }
  0x29   :  { %1369 = vmatprep.subr.bf16.mxu1 %v1476_v43  ;;  %v1503_v17 = vld [vmem:[%s1976_s10 + $0x10] sm:$0xff]  }
  0x2b   :  { %1348 = vmatpush3.bf16.msra.mxu0 %v1477_v44 }
  0x2c   :  { %1370 = vmatpush3.bf16.msra.mxu1 %v1478_v45  ;;  %1349 = vmatprep.subr.bf16.mxu0 %v1479_v46 }
  0x2d   :  { %1371 = vmatprep.subr.bf16.mxu1 %v1480_v47 }
  0x2f   :  { %1350 = vmatpush3.bf16.msra.mxu0 %v1481_v48 }
  0x30   :  { %1372 = vmatpush3.bf16.msra.mxu1 %v1482_v49  ;;  %1351 = vmatprep.subr.bf16.mxu0 %v1483_v50 }
  0x31   :  { %1373 = vmatprep.subr.bf16.mxu1 %v1484_v51 }
  0x33   :  { %1352 = vmatpush3.bf16.msra.mxu0 %v1485_v52 }
  0x34   :  { %1374 = vmatpush3.bf16.msra.mxu1 %v1486_v53 }
  0xe1   :  { %v197_v1 = vpop.f32.mrb[0].mxu0  ;;  %v238_v4 = vpop.f32.mrb[0].mxu1 }
  0xe2   :  { %v198_v6 = vadd.f32 %v197_v1, %v72_v61  ;;  %v239_v7 = vadd.f32 %v238_v4, %v80_v62  ;;  %v199_v8 = vpop.f32.mrb[1].mxu0  ;;  %v240_v10 = vpop.f32.mrb[1].mxu1  ;;  %v1489_v62 = vld [vmem:[%s1975_s9 + $0x4] ss:$16 sps:$4 sm:$0xff]   ;;  %v1490_v1 = vld [vmem:[%s1975_s9 + $0x8] ss:$16 sps:$4 sm:$0xff]  }
  0xe3   :  { %v200_v13 = vadd.f32 %v199_v8, %v76_v63  ;;  %v241_v14 = vadd.f32 %v240_v10, %v84_v0  ;;  %v201_v15 = vpop.f32.mrb[2].mxu0  ;;  %v242_v16 = vpop.f32.mrb[2].mxu1  ;;  %v1492_v63 = vld [vmem:[%s1975_s9 + $0xc] ss:$16 sps:$4 sm:$0xff]   ;;  %v1487_v0 = vld [vmem:[%s1975_s9] ss:$16 sps:$4 sm:$0xff]   ;;  %750 = vmatprep.subr.bf16.mxu0 %v1489_v62 }
  0xe4   :  { %v362_v18 = vadd.f32 %v358_v3, %v198_v6  ;;  %v364_v19 = vadd.f32 %v360_v5, %v239_v7  ;;  %v202_v20 = vpop.f32.mrb[3].mxu0  ;;  %v243_v21 = vpop.f32.mrb[3].mxu1  ;;  %791 = vmatprep.subr.bf16.mxu1 %v1492_v63  ;;  %v1493_v3 = vld [vmem:[%s1976_s10 + $0x40] sm:$0xff]   ;;  %v1501_v15 = vld [vmem:[%s1976_s10 + $0x50] sm:$0xff]  }
  0xe5   :  { %v363_v22 = vadd.f32 %v359_v9, %v200_v13  ;;  %v365_v23 = vadd.f32 %v361_v11, %v241_v14  ;;  %v1494_v4 = vld [vmem:[%s1976_s10 + $0xc0] sm:$0xff]   ;;  %v1497_v11 = vld [vmem:[%s1976_s10 + $0x48] sm:$0xff]   ;;  %v1502_v16 = vld [vmem:[%s1976_s10 + $0xd0] sm:$0xff]  }
  0xe6   :  { %1525 = vtanh.f32 %v362_v18  ;;  %v1495_v8 = vld [vmem:[%s1976_s10] sm:$0xff]   ;;  %v1499_v13 = vld [vmem:[%s1976_s10 + $0x8] sm:$0xff]   ;;  %v1504_v18 = vld [vmem:[%s1976_s10 + $0x90] sm:$0xff]  }
  0xe7   :  { %1527 = vtanh.f32 %v364_v19  ;;  %v1496_v9 = vld [vmem:[%s1976_s10 + $0x80] sm:$0xff]   ;;  %v1500_v14 = vld [vmem:[%s1976_s10 + $0x88] sm:$0xff]   ;;  %v1505_v19 = vld [vmem:[%s1976_s10 + $0x58] sm:$0xff]  }
  0xe8   :  { %1529 = vtanh.f32 %v363_v22  ;;  %v1506_v20 = vld [vmem:[%s1976_s10 + $0xd8] sm:$0xff]   ;;  %v1303_v63 = vld [vmem:[%s1977_s11] ss:$0 sm:$0xff]  ;;  %s1570_s11 = smov 64  }
  0xe9   :  { %1531 = vtanh.f32 %v365_v23  ;;  %v279_v26 = vpop.f32.mrb[4].mxu0  ;;  %v349_v27 = vpop.f32.mrb[4].mxu1  ;;  %v1507_v21 = vld [vmem:[%s1976_s10 + $0x18] sm:$0xff]   ;;  %v1509_v23 = vld [vmem:[%s1976_s10 + $0x60] sm:$0xff]  }
  0xea   :  { %v280_v28 = vadd.f32 %v279_v26, %v88_v24  ;;  %v281_v29 = vpop.f32.mrb[5].mxu0  ;;  %v351_v30 = vpop.f32.mrb[5].mxu1  ;;  %v1508_v22 = vld [vmem:[%s1976_s10 + $0x98] sm:$0xff]   ;;  %v1510_v24 = vld [vmem:[%s1976_s10 + $0xe0] sm:$0xff]  }
  0xeb   :  { %v282_v31 = vadd.f32 %v281_v29, %v92_v25  ;;  %v283_v32 = vpop.f32.mrb[6].mxu0  ;;  %v353_v33 = vpop.f32.mrb[6].mxu1  ;;  %v1511_v25 = vld [vmem:[%s1976_s10 + $0x20] sm:$0xff]   ;;  %v1515_v29 = vld [vmem:[%s1976_s10 + $0x28] sm:$0xff]  }
  0xec   :  { %v1812_v34 = vadd.f32 %v349_v27, %v280_v28  ;;  %v284_v35 = vpop.f32.mrb[7].mxu0  ;;  %v354_v36 = vpop.f32.mrb[7].mxu1  ;;  %v1512_v26 = vld [vmem:[%s1976_s10 + $0xa0] sm:$0xff]   ;;  %v1513_v27 = vld [vmem:[%s1976_s10 + $0x68] sm:$0xff]   ;;  %v1518_v32 = vld [vmem:[%s1976_s10 + $0xf0] sm:$0xff]  }
  0xed   :  { %v1814_v37 = vadd.f32 %v351_v30, %v282_v31  ;;  %v1514_v28 = vld [vmem:[%s1976_s10 + $0xe8] sm:$0xff]   ;;  %v1517_v31 = vld [vmem:[%s1976_s10 + $0x70] sm:$0xff]   ;;  %v1521_v36 = vld [vmem:[%s1976_s10 + $0x78] sm:$0xff]  }
  0xee   :  { %v1516_v30 = vld [vmem:[%s1976_s10 + $0xa8] sm:$0xff]   ;;  %v1519_v33 = vld [vmem:[%s1976_s10 + $0x30] sm:$0xff]  }
  0xef   :  { %v1520_v35 = vld [vmem:[%s1976_s10 + $0xb0] sm:$0xff]  }
  0xf0   :  { %v1526_v38 = vpop.eup %1525 }
  0xf1   :  { %v1528_v39 = vpop.eup %1527  ;;  %v370_v43 = vpack.c.bf16 %v1526_v38, %v1526_v38  ;;  %v1522_v38 = vld [vmem:[%s1976_s10 + $0xf8] sm:$0xff]  }
  0xf2   :  { %v1530_v40 = vpop.eup %1529  ;;  %v372_v45 = vpack.c.bf16 %v1528_v39, %v1528_v39  ;;  %v1523_v39 = vld [vmem:[%s1976_s10 + $0x38] sm:$0xff]  }
  0xf3   :  { %v1532_v41 = vpop.eup %1531  ;;  %v371_v42 = vpack.c.bf16 %v1530_v40, %v1530_v40  ;;  %v1524_v40 = vld [vmem:[%s1976_s10 + $0xb8] sm:$0xff]  }
  0xf4   :  { %v373_v44 = vpack.c.bf16 %v1532_v41, %v1532_v41  ;;  %v832_v41 = vld [vmem:[%s1970_s4] sm:$0xff] }
  0xf5   :  { %662 = vmatprep.mubr.bf16.mxu0 %v371_v42  ;;  %v834_v42 = vld [vmem:[%s1970_s4 + $0x10] sm:$0xff] }
  0xf6   :  { %702 = vmatprep.mubr.bf16.mxu1 %v373_v44  ;;  %663 = vmatmul.mubr.bf16.vlgmr.msra.gmra.mrb[8].mxu0 %v370_v43  ;;  %v833_v43 = vld [vmem:[%s1970_s4 + $0x8] sm:$0xff]  ;;  %v835_v44 = vld [vmem:[%s1970_s4 + $0x18] sm:$0xff] }
  0xf7   :  { %703 = vmatmul.mubr.bf16.vlgmr.msra.gmra.mrb[8].mxu1 %v372_v45  ;;  %782 = vmatprep.mubr.bf16.mxu0 %v1567_v2 }
  0xf8   :  { %823 = vmatprep.mubr.bf16.mxu1 %v1567_v2  ;;  %751 = vmatpush1.bf16.msra.mxu0 %v1487_v0 }
  0xf9   :  { %792 = vmatpush1.bf16.msra.mxu1 %v1490_v1  ;;  %1381 = vmatprep.subr.bf16.mxu0 %v1493_v3 }
  0xfa   :  { %1403 = vmatprep.subr.bf16.mxu1 %v1494_v4 }
 0x1c9   :  { %v1353_v46 = vpop.f32.mrb[8].mxu0 }
 0x1ca   :  { %v1375_v47 = vpop.f32.mrb[8].mxu1  ;;  %v1354_v48 = vpop.f32.mrb[9].mxu0 }
 0x1cb   :  { %v1355_v49 = vadd.f32 %v1354_v48, %v1353_v46  ;;  %v1376_v50 = vpop.f32.mrb[9].mxu1  ;;  %v1356_v51 = vpop.f32.mrb[10].mxu0 }
 0x1cc   :  { %v1377_v52 = vadd.f32 %v1376_v50, %v1375_v47  ;;  %v1378_v53 = vpop.f32.mrb[10].mxu1  ;;  %v1357_v54 = vpop.f32.mrb[11].mxu0 }
 0x1cd   :  { %v1379_v55 = vpop.f32.mrb[11].mxu1 }
 0x1ce   :  { %v705_v56 = vadd.f32 %v1377_v52, %v1355_v49 }
 0x1d0   :  { %v711_v57 = vsel %vm710_vm1, %v705_v56, -inf }
 0x1d1   :  { %712 = vmax.xlane.f32.xlu0 %v711_v57 }
 0x25e   :  { %v713_v58 = vpop.xlane.xlu0 %712 }
 0x25f   :  { %v714_v59 = vsub.f32 %v705_v56, %v713_v58 }
 0x261   :  { %v715_v60 = vmul.f32 1.442695, %v714_v59 }
 0x263   :  { %1533 = vpow2.f32 %v715_v60 }
 0x26d   :  { %v1534_v2 = vpop.eup %1533 }
 0x26e   :  { %v717_v61 = vsel %vm710_vm1, %v1534_v2, 0.0 }
 0x26f   :  { %718 = vadd.xlane.f32.xlu0 %v717_v61 }
 0x2fc   :  { %v719_v5 = vpop.xlane.xlu0 %718 }
 0x2fd   :  { %1535 = vrcp.f32 %v719_v5 }
 0x307   :  { %v1536_v6 = vpop.eup %1535 }
 0x308   :  { %v721_v7 = vmul.f32 %v1536_v6, %v1534_v2  ;;  %v50_v2 = vld [vmem:[%s1968_s2] sm:$0xff]  ;;  %s1568_s2 = smov 96  }
 0x309   :  { %51 = vst.msk [vmem:[#allocation3] sm:$0xff] %vm48_vm0, %v50_v2 }
 0x30a   :  { %v722_v10 = vpack.c.bf16 %v721_v7, %v721_v7 }
 0x30c   :  { %1301 = vmatmul.mubr.msk.bf16.vlgmr.msra.gmra.mrb[12].mxu0 %vm710_vm1, %v722_v10  ;;  %1302 = vmatmul.mubr.msk.bf16.vlgmr.msra.gmra.mrb[12].mxu1 %vm710_vm1, %v722_v10 }
 0x30d   :  { %1382 = vmatpush3.bf16.msra.mxu0 %v1495_v8  ;;  %1404 = vmatpush3.bf16.msra.mxu1 %v1496_v9 }
 0x30e   :  { %1383 = vmatprep.subr.bf16.mxu0 %v1497_v11  ;;  %1405 = vmatprep.subr.bf16.mxu1 %v1498_v12 }
 0x310   :  { %v53_v12 = vld [vmem:[#allocation3] sm:$0xff] }
 0x311   :  { %1384 = vmatpush3.bf16.msra.mxu0 %v1499_v13  ;;  %1406 = vmatpush3.bf16.msra.mxu1 %v1500_v14  ;;  %v1336_v13 = vmul.f32 -1.442695, %v1814_v37 }
 0x312   :  { %1385 = vmatprep.subr.bf16.mxu0 %v1501_v15  ;;  %1407 = vmatprep.subr.bf16.mxu1 %v1502_v16 }
 0x313   :  { %1537 = vpow2.f32 %v1336_v13 }
 0x315   :  { %1386 = vmatpush3.bf16.msra.mxu0 %v1503_v17  ;;  %1408 = vmatpush3.bf16.msra.mxu1 %v1504_v18 }
 0x316   :  { %1387 = vmatprep.subr.bf16.mxu0 %v1505_v19  ;;  %1409 = vmatprep.subr.bf16.mxu1 %v1506_v20 }
 0x319   :  { %1388 = vmatpush3.bf16.msra.mxu0 %v1507_v21  ;;  %1410 = vmatpush3.bf16.msra.mxu1 %v1508_v22 }
 0x31a   :  { %1389 = vmatprep.subr.bf16.mxu0 %v1509_v23  ;;  %1411 = vmatprep.subr.bf16.mxu1 %v1510_v24 }
 0x31d   :  { %1390 = vmatpush3.bf16.msra.mxu0 %v1511_v25  ;;  %1412 = vmatpush3.bf16.msra.mxu1 %v1512_v26  ;;  %v1538_v14 = vpop.eup %1537  ;;  %v1572_v26 = vmov 0.0  }
 0x31e   :  { %1391 = vmatprep.subr.bf16.mxu0 %v1513_v27  ;;  %1413 = vmatprep.subr.bf16.mxu1 %v1514_v28  ;;  %v1196_v15 = vadd.f32 1.0, %v1538_v14 }
 0x320   :  { %1539 = vrcp.f32 %v1196_v15 }
 0x321   :  { %1392 = vmatpush3.bf16.msra.mxu0 %v1515_v29  ;;  %1414 = vmatpush3.bf16.msra.mxu1 %v1516_v30 }
 0x322   :  { %1393 = vmatprep.subr.bf16.mxu0 %v1517_v31  ;;  %1415 = vmatprep.subr.bf16.mxu1 %v1518_v32 }
 0x325   :  { %1394 = vmatpush3.bf16.msra.mxu0 %v1519_v33  ;;  %1416 = vmatpush3.bf16.msra.mxu1 %v1520_v35 }
 0x326   :  { %1395 = vmatprep.subr.bf16.mxu0 %v1521_v36  ;;  %1417 = vmatprep.subr.bf16.mxu1 %v1522_v38 }
 0x329   :  { %1396 = vmatpush3.bf16.msra.mxu0 %v1523_v39  ;;  %1418 = vmatpush3.bf16.msra.mxu1 %v1524_v40 }
 0x32a   :  { %v1540_v18 = vpop.eup %1539 }
 0x3df   :  { %v784_v45 = vpop.f32.mrb[12].mxu0  ;;  %v825_v46 = vpop.f32.mrb[12].mxu1 }
 0x3e0   :  { %v836_v47 = vmul.f32 %v832_v41, %v784_v45  ;;  %v838_v48 = vmul.f32 %v834_v42, %v825_v46  ;;  %v786_v49 = vpop.f32.mrb[13].mxu0  ;;  %v827_v50 = vpop.f32.mrb[13].mxu1 }
 0x3e1   :  { %v837_v51 = vmul.f32 %v833_v43, %v786_v49  ;;  %v839_v52 = vmul.f32 %v835_v44, %v827_v50  ;;  %v788_v53 = vpop.f32.mrb[14].mxu0  ;;  %v829_v54 = vpop.f32.mrb[14].mxu1 }
 0x3e2   :  { %v789_v55 = vpop.f32.mrb[15].mxu0  ;;  %v830_v56 = vpop.f32.mrb[15].mxu1  ;;  %v840_v59 = vpack.c.bf16 %v836_v47, %v836_v47  ;;  %v842_v60 = vpack.c.bf16 %v838_v48, %v838_v48 }
 0x3e3   :  { %v841_v57 = vpack.c.bf16 %v837_v51, %v837_v51  ;;  %v843_v58 = vpack.c.bf16 %v839_v52, %v839_v52 }
 0x3e5   :  { %1139 = vmatprep.mubr.bf16.mxu0 %v841_v57  ;;  %1179 = vmatprep.mubr.bf16.mxu1 %v843_v58 }
 0x3e6   :  { %1140 = vmatmul.mubr.bf16.vlgmr.msra.gmra.mrb[16].mxu0 %v840_v59  ;;  %1180 = vmatmul.mubr.bf16.vlgmr.msra.gmra.mrb[16].mxu1 %v842_v60 }
 0x4b9   :  { %v1397_v61 = vpop.f32.mrb[16].mxu0  ;;  %v1419_v62 = vpop.f32.mrb[16].mxu1 }
 0x4ba   :  { %v1398_v0 = vpop.f32.mrb[17].mxu0  ;;  %v1420_v1 = vpop.f32.mrb[17].mxu1 }
 0x4bb   :  { %v1399_v3 = vadd.f32 %v1398_v0, %v1397_v61  ;;  %v1421_v4 = vadd.f32 %v1420_v1, %v1419_v62  ;;  %v1400_v5 = vpop.f32.mrb[18].mxu0  ;;  %v1422_v6 = vpop.f32.mrb[18].mxu1 }
 0x4bc   :  { %v1401_v7 = vpop.f32.mrb[19].mxu0  ;;  %v1423_v8 = vpop.f32.mrb[19].mxu1 }
 0x4bd   :  { %v1142_v9 = vadd.f32 %v1399_v3, %v1303_v63 }
 0x4bf   :  { %v1182_v10 = vadd.f32 %v1421_v4, %v1142_v9 }
 0x4c1   :  { %v1187_v11 = vadd.f32 %v1182_v10, %v1812_v34 }
 0x4c3   :  { %1189 = vrot.lane.b32.xlu1 %v1187_v11, %s1568_s2 }
 0x4c7   :  { %1200 = vrot.lane.b32.xlu1 %v53_v12, %s1569_s26 }
 0x535   :  { %v1190_v16 = vpop.permute.xlu1 %1189 }
 0x536   :  { %v1192_v17 = vmax.f32 %v1187_v11, %v1190_v16 }
 0x538   :  { %v1204_v19 = vmul.f32 %v1540_v18, %v1192_v17 }
 0x539   :  { %v1201_v20 = vpop.permute.xlu1 %1200 }
 0x53a   :  { %1206 = vrot.lane.b32.xlu0 %v1204_v19, %s1569_s26  ;;  %v1203_v21 = vmul.f32 %v1540_v18, %v1201_v20 }
 0x5ac   :  { %v1207_v22 = vpop.permute.xlu0 %1206 }
 0x5ad   :  { %v1209_v34 = vadd.f32 %v1207_v22, %v1203_v21 }
 0x5af   :  { %1541 = vtanh.f32 %v1209_v34 }
 0x5b9   :  { %v1542_v23 = vpop.eup %1541 }
 0x5ba   :  { %1212 = vrot.lane.b32.xlu1 %v1542_v23, %s1569_s26 }
 0x62c   :  { %v1213_v24 = vpop.permute.xlu1 %1212 }
 0x62d   :  { %v1215_v25 = vmul.f32 %v1540_v18, %v1213_v24 }
 0x62f   :  { %1217 = vrot.lane.b32.xlu1 %v1215_v25, %s1570_s11 }
 0x633   :  { %1222 = vrot.lane.b32.xlu1 %v1209_v34, %s1568_s2 }
 0x6a1   :  { %v1218_v37 = vpop.permute.xlu1 %1217 }
 0x6a2   :  { %1220 = vst.msk [vmem:[#allocation2] sm:$0xff] %vm48_vm0, %v1218_v37  ;;  %1226 = vst.msk [vmem:[#allocation4] sm:$0xff] %vm48_vm0, %v1218_v37 }
 0x6a3   :  { %1228 = vst.msk [vmem:[#allocation4] sm:$0xff] %vm1227_vm2, %v1209_v34 }
 0x6a4   :  { %1230 = vst.msk [vmem:[#allocation4] sm:$0xff] %vm1229_vm3, %v1572_v26 }
 0x6a5   :  { %v1223_v27 = vpop.permute.xlu1 %1222 }
 0x6a6   :  { %1554 = shalt.err (!%p1551_p4)
}
 0x6a7   :  { %s1555_s13 = scalar_lea.hbm %s1978_s12, 128 }
 0x6a8   :  { %p1556_p5 = scmp.ne.s32.totalorder %s1978_s12, %s1555_s13  ;;  %p1559_p6 = scmp.lt.u32.totalorder %s1555_s13, %s1978_s12 }
 0x6aa   :  { %p1561_p7 = pnand %p1559_p6, %p1556_p5 }
 0x6ac   :  { %1564 = shalt.err (!%p1561_p7)
}
 0x6ad   :  { %1240 = dma.vmem_to_hbm [thread:$0]  %s1238_s27, 128, %s1978_s12, [#allocation5]   ;;  %1225 = vst.msk [vmem:[#allocation3] sm:$0xff] %vm48_vm0, %v1223_v27 }
 0x6ae   :  { %1565 = dma.done.wait [#allocation5], 128  }
 0x6af   :  { %1566 = vsyncadd [#allocation5], 4294967168 }
 0x6b0   :  { %1244 = vsyncpa [#allocation5], 1 }

</bundles_post_ra>
